<compile_context>
chip_gen: v5e
topology: v5e:2x2
jax: 0.10.0
libtpu: 0.0.40
codegen_flags: <defaults>
</compile_context>

<pallas_src>
from functools import partial

import jax
import jax.numpy as jnp
from jax.experimental import pallas as pl
from jax.experimental.pallas import tpu as pltpu


def _round_up(x, m):
    return -(-x // m) * m


def _choose_tb(batch, max_tb=2048):
    """Pick the lane (batch) tile size: 128-aligned, large, even #tiles when cheap."""
    b128 = _round_up(batch, 128)
    if b128 <= 128:
        return 128                                   # single tiny tile
    if b128 <= 2 * max_tb:
        return _round_up(-(-b128 // 2), 128)         # exactly two even tiles
    return max_tb


def _sindy_kernel(xT_ref, m_ref, w_ref, b_ref, oT_ref, op_ref):
    """Computes one (n, tb) tile of out^T.

    xT_ref: (n, tb)        batch slab of x^T (batch on lanes)
    m_ref : (n, 1)         m as a column (lane-broadcast)
    w_ref : (n, n + n*n)   fused operator [A | H]   (resident)
    b_ref : (n, 1)         bias B as a column (lane-broadcast)
    oT_ref: (n, tb)        output slab of out^T
    op_ref: (n + n*n, tb)  VMEM scratch: matmul operand [xc ; kron(xc, xc)^T]
    """
    n = w_ref.shape[0]

    xc = xT_ref[...] - m_ref[...]                     # (n, tb), centered, lane-dense

    # Operand rows [0, n): the linear part.
    op_ref[0:n, :] = xc

    # Operand rows [n + i*n, n + (i+1)*n): kron slab i, i.e.
    # op[n + i*n + j, b] = xc[i, b] * xc[j, b]  (matches kron column i*n + j).
    # Aligned sublane slabs; multiplies/stores interleave, keeping vreg use low.
    for i in range(n):
        op_ref[n + i * n: n + (i + 1) * n, :] = xc[i:i + 1, :] * xc

    # Single fused MXU matmul: [A | H] @ [xc ; kron]  ->  (n, tb)
    out = jnp.dot(w_ref[...], op_ref[...], preferred_element_type=jnp.float32)

    oT_ref[...] = (out + b_ref[...]).astype(oT_ref.dtype)   # + B.T  (B_term=True)


@partial(jax.jit, static_argnames=("tb",))
def _sindy_forward_impl(x, m, A, H, B, *, tb):
    batch, n = x.shape
    nk = n + n * n
    padded = _round_up(batch, tb)

    # One-time parameter layout (fused under the same jit as the kernel).
    W = jnp.concatenate([A, H], axis=1)               # (n, n + n*n)
    m_col = m.reshape(1, n).T                         # (n, 1)
    b_col = B.reshape(n, 1)                           # (n, 1)

    # Batch onto the lane axis; zero-pad to a tile multiple (padded cols dropped).
    xT = x.T
    if padded != batch:
        xT = jnp.pad(xT, ((0, 0), (0, padded - batch)))

    outT = pl.pallas_call(
        _sindy_kernel,
        out_shape=jax.ShapeDtypeStruct((n, padded), x.dtype),
        grid_spec=pltpu.PrefetchScalarGridSpec(
            num_scalar_prefetch=0,
            grid=(padded // tb,),
            in_specs=[
                pl.BlockSpec((n, tb), lambda i: (0, i)),    # x^T tile (lane-dense)
                pl.BlockSpec((n, 1), lambda i: (0, 0)),     # m column (resident)
                pl.BlockSpec((n, nk), lambda i: (0, 0)),    # [A | H]  (resident)
                pl.BlockSpec((n, 1), lambda i: (0, 0)),     # B column (resident)
            ],
            out_specs=pl.BlockSpec((n, tb), lambda i: (0, i)),
            scratch_shapes=[pltpu.VMEM((nk, tb), jnp.float32)],
        ),
        compiler_params=pltpu.CompilerParams(
            dimension_semantics=("parallel",)),
    )(xT, m_col, W, b_col)

    # Back to the module's (batch, n) layout; drop padding.
    return outT[:, :batch].T


def sindy_forward(x, m, A, H, B, *, max_tb=2048):
    """x: (batch, n), m: (1, n), A: (n, n), H: (n, n*n), B: (n, 1) -> (batch, n)."""
    tb = _choose_tb(x.shape[0], max_tb)
    return _sindy_forward_impl(x, m, A, H, B, tb=tb)


if __name__ == "__main__":
    n = 16          # sys_order
    batch = 500     # not a multiple of 128: exercises padding; grid = 2 tiles of 256
    fac = 10.0

    key = jax.random.PRNGKey(0)
    kJ, kR, kQ, kB, km, kH, kx = jax.random.split(key, 7)

    # Parameter shapes follow the module's __init__.  B, m, _H_tensor are zero
    # in __init__; small random values here so every forward term is exercised.
    _J = jax.random.normal(kJ, (n, n), jnp.float32) / fac
    _R = jax.random.normal(kR, (n, n), jnp.float32) / fac
    _Q = jax.random.normal(kQ, (n, n), jnp.float32) / fac   # unused in forward (Q = I)
    B_param = jax.random.normal(kB, (n, 1), jnp.float32) / fac
    m_param = jax.random.normal(km, (1, n), jnp.float32) / fac
    _H_tensor = jax.random.normal(kH, (n, n, n), jnp.float32) / fac

    # Parameter construction (module @property logic) stays in plain JAX.
    A = (_J - _J.T) - _R @ _R.T                               # stable matrix, Q = identity
    J_tensor = _H_tensor - jnp.transpose(_H_tensor, (0, 2, 1))
    H = jnp.transpose(J_tensor, (1, 0, 2)).reshape(n, n * n)  # energy-preserving quadratic op

    x = jax.random.normal(kx, (batch, n), jnp.float32)

    out = jax.block_until_ready(sindy_forward(x, m_param, A, H, B_param))

    # Pure-JAX reference (row-wise kron, exactly the PyTorch semantics).
    xc = x - m_param
    kron_xx = jnp.einsum("bi,bj->bij", xc, xc).reshape(batch, n * n)
    ref = (jnp.dot(xc, A.T, precision="highest")
           + jnp.dot(kron_xx, H.T, precision="highest")
           + B_param.T)
    err = float(jnp.max(jnp.abs(out - ref)))
    assert jnp.allclose(out, ref, atol=1e-3, rtol=1e-3), f"max abs err {err}"

    print("KERNEL_OK")
</pallas_src>

<mosaic_0001>
module attributes {stable_mosaic.version = 11 : i64} {
  func.func @_sindy_kernel(%arg0: i32, %arg1: memref<16x256xf32, #tpu.memory_space<vmem>>, %arg2: memref<16x1xf32, #tpu.memory_space<vmem>>, %arg3: memref<16x272xf32, #tpu.memory_space<vmem>>, %arg4: memref<16x1xf32, #tpu.memory_space<vmem>>, %arg5: memref<16x256xf32, #tpu.memory_space<vmem>>, %arg6: memref<272x256xf32, #tpu.memory_space<vmem>>) attributes {dimension_semantics = [#tpu.dimension_semantics<parallel>], iteration_bounds = array<i64: 2>, scalar_prefetch = 0 : i64, scratch_operands = 1 : i64, tpu.core_type = #tpu.core_type<tc>, window_params = [{transform_indices = @transform_0, window_bounds = array<i64: 16, 256>}, {pipeline_mode = #tpu.pipeline_mode<synchronous>, transform_indices = @transform_1, window_bounds = array<i64: 16, 1>}, {pipeline_mode = #tpu.pipeline_mode<synchronous>, transform_indices = @transform_2, window_bounds = array<i64: 16, 272>}, {pipeline_mode = #tpu.pipeline_mode<synchronous>, transform_indices = @transform_3, window_bounds = array<i64: 16, 1>}, {transform_indices = @transform_4, window_bounds = array<i64: 16, 256>}]} {
    %c0 = arith.constant 0 : index
    %c0_0 = arith.constant 0 : index
    %0 = vector.load %arg1[%c0, %c0_0] : memref<16x256xf32, #tpu.memory_space<vmem>>, vector<16x256xf32>
    %c0_1 = arith.constant 0 : index
    %c0_2 = arith.constant 0 : index
    %1 = vector.load %arg2[%c0_1, %c0_2] : memref<16x1xf32, #tpu.memory_space<vmem>>, vector<16x1xf32>
    %2 = vector.broadcast %1 : vector<16x1xf32> to vector<16x256xf32>
    %3 = arith.subf %0, %2 : vector<16x256xf32>
    %c0_3 = arith.constant 0 : index
    %c0_4 = arith.constant 0 : index
    %4 = vector.load %arg6[%c0_3, %c0_4] : memref<272x256xf32, #tpu.memory_space<vmem>>, vector<16x256xf32>
    tpu.vector_store %arg6[%c0_3, %c0_4], %3 {strides = array<i32>} : memref<272x256xf32, #tpu.memory_space<vmem>>, vector<16x256xf32>,
    %5 = vector.extract_strided_slice %3 {offsets = [0, 0], sizes = [1, 256], strides = [1, 1]} : vector<16x256xf32> to vector<1x256xf32>
    %6 = vector.broadcast %5 : vector<1x256xf32> to vector<16x256xf32>
    %7 = arith.mulf %6, %3 : vector<16x256xf32>
    %c16 = arith.constant 16 : index
    %c0_5 = arith.constant 0 : index
    %8 = vector.load %arg6[%c16, %c0_5] : memref<272x256xf32, #tpu.memory_space<vmem>>, vector<16x256xf32>
    tpu.vector_store %arg6[%c16, %c0_5], %7 {strides = array<i32>} : memref<272x256xf32, #tpu.memory_space<vmem>>, vector<16x256xf32>,
    %9 = vector.extract_strided_slice %3 {offsets = [1, 0], sizes = [1, 256], strides = [1, 1]} : vector<16x256xf32> to vector<1x256xf32>
    %10 = vector.broadcast %9 : vector<1x256xf32> to vector<16x256xf32>
    %11 = arith.mulf %10, %3 : vector<16x256xf32>
    %c32 = arith.constant 32 : index
    %c0_6 = arith.constant 0 : index
    %12 = vector.load %arg6[%c32, %c0_6] : memref<272x256xf32, #tpu.memory_space<vmem>>, vector<16x256xf32>
    tpu.vector_store %arg6[%c32, %c0_6], %11 {strides = array<i32>} : memref<272x256xf32, #tpu.memory_space<vmem>>, vector<16x256xf32>,
    %13 = vector.extract_strided_slice %3 {offsets = [2, 0], sizes = [1, 256], strides = [1, 1]} : vector<16x256xf32> to vector<1x256xf32>
    %14 = vector.broadcast %13 : vector<1x256xf32> to vector<16x256xf32>
    %15 = arith.mulf %14, %3 : vector<16x256xf32>
    %c48 = arith.constant 48 : index
    %c0_7 = arith.constant 0 : index
    %16 = vector.load %arg6[%c48, %c0_7] : memref<272x256xf32, #tpu.memory_space<vmem>>, vector<16x256xf32>
    tpu.vector_store %arg6[%c48, %c0_7], %15 {strides = array<i32>} : memref<272x256xf32, #tpu.memory_space<vmem>>, vector<16x256xf32>,
    %17 = vector.extract_strided_slice %3 {offsets = [3, 0], sizes = [1, 256], strides = [1, 1]} : vector<16x256xf32> to vector<1x256xf32>
    %18 = vector.broadcast %17 : vector<1x256xf32> to vector<16x256xf32>
    %19 = arith.mulf %18, %3 : vector<16x256xf32>
    %c64 = arith.constant 64 : index
    %c0_8 = arith.constant 0 : index
    %20 = vector.load %arg6[%c64, %c0_8] : memref<272x256xf32, #tpu.memory_space<vmem>>, vector<16x256xf32>
    tpu.vector_store %arg6[%c64, %c0_8], %19 {strides = array<i32>} : memref<272x256xf32, #tpu.memory_space<vmem>>, vector<16x256xf32>,
    %21 = vector.extract_strided_slice %3 {offsets = [4, 0], sizes = [1, 256], strides = [1, 1]} : vector<16x256xf32> to vector<1x256xf32>
    %22 = vector.broadcast %21 : vector<1x256xf32> to vector<16x256xf32>
    %23 = arith.mulf %22, %3 : vector<16x256xf32>
    %c80 = arith.constant 80 : index
    %c0_9 = arith.constant 0 : index
    %24 = vector.load %arg6[%c80, %c0_9] : memref<272x256xf32, #tpu.memory_space<vmem>>, vector<16x256xf32>
    tpu.vector_store %arg6[%c80, %c0_9], %23 {strides = array<i32>} : memref<272x256xf32, #tpu.memory_space<vmem>>, vector<16x256xf32>,
    %25 = vector.extract_strided_slice %3 {offsets = [5, 0], sizes = [1, 256], strides = [1, 1]} : vector<16x256xf32> to vector<1x256xf32>
    %26 = vector.broadcast %25 : vector<1x256xf32> to vector<16x256xf32>
    %27 = arith.mulf %26, %3 : vector<16x256xf32>
    %c96 = arith.constant 96 : index
    %c0_10 = arith.constant 0 : index
    %28 = vector.load %arg6[%c96, %c0_10] : memref<272x256xf32, #tpu.memory_space<vmem>>, vector<16x256xf32>
    tpu.vector_store %arg6[%c96, %c0_10], %27 {strides = array<i32>} : memref<272x256xf32, #tpu.memory_space<vmem>>, vector<16x256xf32>,
    %29 = vector.extract_strided_slice %3 {offsets = [6, 0], sizes = [1, 256], strides = [1, 1]} : vector<16x256xf32> to vector<1x256xf32>
    %30 = vector.broadcast %29 : vector<1x256xf32> to vector<16x256xf32>
    %31 = arith.mulf %30, %3 : vector<16x256xf32>
    %c112 = arith.constant 112 : index
    %c0_11 = arith.constant 0 : index
    %32 = vector.load %arg6[%c112, %c0_11] : memref<272x256xf32, #tpu.memory_space<vmem>>, vector<16x256xf32>
    tpu.vector_store %arg6[%c112, %c0_11], %31 {strides = array<i32>} : memref<272x256xf32, #tpu.memory_space<vmem>>, vector<16x256xf32>,
    %33 = vector.extract_strided_slice %3 {offsets = [7, 0], sizes = [1, 256], strides = [1, 1]} : vector<16x256xf32> to vector<1x256xf32>
    %34 = vector.broadcast %33 : vector<1x256xf32> to vector<16x256xf32>
    %35 = arith.mulf %34, %3 : vector<16x256xf32>
    %c128 = arith.constant 128 : index
    %c0_12 = arith.constant 0 : index
    %36 = vector.load %arg6[%c128, %c0_12] : memref<272x256xf32, #tpu.memory_space<vmem>>, vector<16x256xf32>
    tpu.vector_store %arg6[%c128, %c0_12], %35 {strides = array<i32>} : memref<272x256xf32, #tpu.memory_space<vmem>>, vector<16x256xf32>,
    %37 = vector.extract_strided_slice %3 {offsets = [8, 0], sizes = [1, 256], strides = [1, 1]} : vector<16x256xf32> to vector<1x256xf32>
    %38 = vector.broadcast %37 : vector<1x256xf32> to vector<16x256xf32>
    %39 = arith.mulf %38, %3 : vector<16x256xf32>
    %c144 = arith.constant 144 : index
    %c0_13 = arith.constant 0 : index
    %40 = vector.load %arg6[%c144, %c0_13] : memref<272x256xf32, #tpu.memory_space<vmem>>, vector<16x256xf32>
    tpu.vector_store %arg6[%c144, %c0_13], %39 {strides = array<i32>} : memref<272x256xf32, #tpu.memory_space<vmem>>, vector<16x256xf32>,
    %41 = vector.extract_strided_slice %3 {offsets = [9, 0], sizes = [1, 256], strides = [1, 1]} : vector<16x256xf32> to vector<1x256xf32>
    %42 = vector.broadcast %41 : vector<1x256xf32> to vector<16x256xf32>
    %43 = arith.mulf %42, %3 : vector<16x256xf32>
    %c160 = arith.constant 160 : index
    %c0_14 = arith.constant 0 : index
    %44 = vector.load %arg6[%c160, %c0_14] : memref<272x256xf32, #tpu.memory_space<vmem>>, vector<16x256xf32>
    tpu.vector_store %arg6[%c160, %c0_14], %43 {strides = array<i32>} : memref<272x256xf32, #tpu.memory_space<vmem>>, vector<16x256xf32>,
    %45 = vector.extract_strided_slice %3 {offsets = [10, 0], sizes = [1, 256], strides = [1, 1]} : vector<16x256xf32> to vector<1x256xf32>
    %46 = vector.broadcast %45 : vector<1x256xf32> to vector<16x256xf32>
    %47 = arith.mulf %46, %3 : vector<16x256xf32>
    %c176 = arith.constant 176 : index
    %c0_15 = arith.constant 0 : index
    %48 = vector.load %arg6[%c176, %c0_15] : memref<272x256xf32, #tpu.memory_space<vmem>>, vector<16x256xf32>
    tpu.vector_store %arg6[%c176, %c0_15], %47 {strides = array<i32>} : memref<272x256xf32, #tpu.memory_space<vmem>>, vector<16x256xf32>,
    %49 = vector.extract_strided_slice %3 {offsets = [11, 0], sizes = [1, 256], strides = [1, 1]} : vector<16x256xf32> to vector<1x256xf32>
    %50 = vector.broadcast %49 : vector<1x256xf32> to vector<16x256xf32>
    %51 = arith.mulf %50, %3 : vector<16x256xf32>
    %c192 = arith.constant 192 : index
    %c0_16 = arith.constant 0 : index
    %52 = vector.load %arg6[%c192, %c0_16] : memref<272x256xf32, #tpu.memory_space<vmem>>, vector<16x256xf32>
    tpu.vector_store %arg6[%c192, %c0_16], %51 {strides = array<i32>} : memref<272x256xf32, #tpu.memory_space<vmem>>, vector<16x256xf32>,
    %53 = vector.extract_strided_slice %3 {offsets = [12, 0], sizes = [1, 256], strides = [1, 1]} : vector<16x256xf32> to vector<1x256xf32>
    %54 = vector.broadcast %53 : vector<1x256xf32> to vector<16x256xf32>
    %55 = arith.mulf %54, %3 : vector<16x256xf32>
    %c208 = arith.constant 208 : index
    %c0_17 = arith.constant 0 : index
    %56 = vector.load %arg6[%c208, %c0_17] : memref<272x256xf32, #tpu.memory_space<vmem>>, vector<16x256xf32>
    tpu.vector_store %arg6[%c208, %c0_17], %55 {strides = array<i32>} : memref<272x256xf32, #tpu.memory_space<vmem>>, vector<16x256xf32>,
    %57 = vector.extract_strided_slice %3 {offsets = [13, 0], sizes = [1, 256], strides = [1, 1]} : vector<16x256xf32> to vector<1x256xf32>
    %58 = vector.broadcast %57 : vector<1x256xf32> to vector<16x256xf32>
    %59 = arith.mulf %58, %3 : vector<16x256xf32>
    %c224 = arith.constant 224 : index
    %c0_18 = arith.constant 0 : index
    %60 = vector.load %arg6[%c224, %c0_18] : memref<272x256xf32, #tpu.memory_space<vmem>>, vector<16x256xf32>
    tpu.vector_store %arg6[%c224, %c0_18], %59 {strides = array<i32>} : memref<272x256xf32, #tpu.memory_space<vmem>>, vector<16x256xf32>,
    %61 = vector.extract_strided_slice %3 {offsets = [14, 0], sizes = [1, 256], strides = [1, 1]} : vector<16x256xf32> to vector<1x256xf32>
    %62 = vector.broadcast %61 : vector<1x256xf32> to vector<16x256xf32>
    %63 = arith.mulf %62, %3 : vector<16x256xf32>
    %c240 = arith.constant 240 : index
    %c0_19 = arith.constant 0 : index
    %64 = vector.load %arg6[%c240, %c0_19] : memref<272x256xf32, #tpu.memory_space<vmem>>, vector<16x256xf32>
    tpu.vector_store %arg6[%c240, %c0_19], %63 {strides = array<i32>} : memref<272x256xf32, #tpu.memory_space<vmem>>, vector<16x256xf32>,
    %65 = vector.extract_strided_slice %3 {offsets = [15, 0], sizes = [1, 256], strides = [1, 1]} : vector<16x256xf32> to vector<1x256xf32>
    %66 = vector.broadcast %65 : vector<1x256xf32> to vector<16x256xf32>
    %67 = arith.mulf %66, %3 : vector<16x256xf32>
    %c256 = arith.constant 256 : index
    %c0_20 = arith.constant 0 : index
    %68 = vector.load %arg6[%c256, %c0_20] : memref<272x256xf32, #tpu.memory_space<vmem>>, vector<16x256xf32>
    tpu.vector_store %arg6[%c256, %c0_20], %67 {strides = array<i32>} : memref<272x256xf32, #tpu.memory_space<vmem>>, vector<16x256xf32>,
    %c0_21 = arith.constant 0 : index
    %c0_22 = arith.constant 0 : index
    %69 = vector.load %arg3[%c0_21, %c0_22] : memref<16x272xf32, #tpu.memory_space<vmem>>, vector<16x272xf32>
    %c0_23 = arith.constant 0 : index
    %c0_24 = arith.constant 0 : index
    %70 = vector.load %arg6[%c0_23, %c0_24] : memref<272x256xf32, #tpu.memory_space<vmem>>, vector<272x256xf32>
    %cst = arith.constant dense<0.000000e+00> : vector<16x256xf32>
    %71 = tpu.matmul %69, %70, %cst {dimension_numbers = #tpu.dot_dimension_numbers<[1], [0], [0], [1], [0, 0, 1, 1], [], []>} : vector<16x272xf32>, vector<272x256xf32>, vector<16x256xf32> -> vector<16x256xf32>
    %c0_25 = arith.constant 0 : index
    %c0_26 = arith.constant 0 : index
    %72 = vector.load %arg4[%c0_25, %c0_26] : memref<16x1xf32, #tpu.memory_space<vmem>>, vector<16x1xf32>
    %73 = vector.broadcast %72 : vector<16x1xf32> to vector<16x256xf32>
    %74 = arith.addf %71, %73 : vector<16x256xf32>
    %c0_27 = arith.constant 0 : index
    %c0_28 = arith.constant 0 : index
    %75 = vector.load %arg5[%c0_27, %c0_28] : memref<16x256xf32, #tpu.memory_space<vmem>>, vector<16x256xf32>
    tpu.vector_store %arg5[%c0_27, %c0_28], %74 {strides = array<i32>} : memref<16x256xf32, #tpu.memory_space<vmem>>, vector<16x256xf32>,
    return
  }
  func.func @transform_0(%arg0: i32) -> (i32, i32) {
    %c0_i32 = arith.constant 0 : i32
    %c0_i32_0 = arith.constant 0 : i32
    return %c0_i32, %arg0 : i32, i32
  }
  func.func @transform_1(%arg0: i32) -> (i32, i32) {
    %c0_i32 = arith.constant 0 : i32
    %c0_i32_0 = arith.constant 0 : i32
    %c0_i32_1 = arith.constant 0 : i32
    return %c0_i32, %c0_i32_0 : i32, i32
  }
  func.func @transform_2(%arg0: i32) -> (i32, i32) {
    %c0_i32 = arith.constant 0 : i32
    %c0_i32_0 = arith.constant 0 : i32
    %c0_i32_1 = arith.constant 0 : i32
    return %c0_i32, %c0_i32_0 : i32, i32
  }
  func.func @transform_3(%arg0: i32) -> (i32, i32) {
    %c0_i32 = arith.constant 0 : i32
    %c0_i32_0 = arith.constant 0 : i32
    %c0_i32_1 = arith.constant 0 : i32
    return %c0_i32, %c0_i32_0 : i32, i32
  }
  func.func @transform_4(%arg0: i32) -> (i32, i32) {
    %c0_i32 = arith.constant 0 : i32
    %c0_i32_0 = arith.constant 0 : i32
    return %c0_i32, %arg0 : i32, i32
  }
}

</mosaic_0001>

<bundles_post_ra>
// kernel: _sindy_forward_impl.1
= control target key start
LH: loop header
LB: loop body
LE: loop exit
PB: predicated region body
PF: predicated region fallthrough
CT: control target
= control target key end

     0   :  { %s828_s15 = smov 0   ;;  %s830_s16 = smov 0   ;;  %s1038_s0 = inlined_call_operand.vmem [shape: f32[16,512], index: 0, kind: input, shape index: {}]   ;;  %s1039_s1 = inlined_call_operand.vmem [shape: f32[16,1], index: 1, kind: input, shape index: {}]   ;;  %s1040_s2 = inlined_call_operand.vmem [shape: f32[16,272], index: 2, kind: input, shape index: {}]   ;;  %s1041_s3 = inlined_call_operand.vmem [shape: f32[16,1], index: 3, kind: input, shape index: {}]   ;;  %s1042_s4 = inlined_call_operand.vmem [shape: f32[16,512], index: 4, kind: output, shape index: {}]  }
   0x1   :  { %s832_s17 = smov 0  }
   0x2 LB: > { %s728_s18 = sadd.s32 4294967295, %s800_s17   ;;  %s845_s19 = sadd.s32 1, %s800_s17   ;;  %s800_s17 = sphi %s832_s17, %s1046_s17   ;;  %s796_s16 = sphi %s830_s16, %s1045_s16   ;;  %s792_s15 = sphi %s828_s15, %s1044_s15  }
   0x3   : > { %s18_s20 = ssub.s32 %s800_s17, %s845_s19  ;;  %s21_s21 = sadd.s32 1, %s796_s16 }
   0x4   : > { %p19_p0 = scmp.eq.s32.totalorder %s18_s20, 0  ;;  %p28_p1 = scmp.ne.s32.totalorder %s796_s16, %s792_s15 }
   0x5   : > { %p29_p2 = scmp.eq.s32.totalorder %s800_s17, 0  ;;  %p121_p3 = scmp.eq.s32.totalorder %s728_s18, 1 }
   0x6   : > { %s856_s22 = scalar_select %p19_p0, %s796_s16, %s21_s21  }
   0x7   : > { %p30_p4 = por %p29_p2, %p28_p1  ;;  %p858_p5 = por %p121_p3, %p28_p1 }
   0x8   : > { %p731_p6 = scmp.ge.s32.totalorder %s800_s17, 2 }
   0xa   : > { %152 = sbr.rel (%p731_p6) target bundleno = 23 (0x17), region = 28 }
   0xf   : > { %155 = sbr.rel (!%p30_p4) target bundleno = 23 (0x17), region = 32  ;;  %s157_s24 = sand.u32 (%p30_p4), 1, %s796_s16  }
  0x10   : > { %s747_s25 = sshll.u32 (%p30_p4), %s800_s17, 4  ;;  %s732_s26 = sshll.u32 (%p30_p4), %s157_s24, 5 }
  0x11   : > { %s162_s29 = scalar_lea.vmem (%p30_p4), %s1038_s0, %s747_s25  ;;  %s159_s30 = scalar_lea.vmem (%p30_p4), [#allocation3], %s732_s26 }
  0x12   : > { %v175_v0 = vld [vmem:[%s162_s29] sm:$0xff] (%p30_p4)  ;;  %v177_v1 = vld [vmem:[%s162_s29 + $0x8] sm:$0xff] (%p30_p4) }
  0x13   : > { %v179_v2 = vld [vmem:[%s162_s29 + $0x20] sm:$0xff] (%p30_p4)  ;;  %176 = vst [vmem:[%s159_s30] sm:$0xff] (%p30_p4), %v175_v0  ;;  %v181_v3 = vld [vmem:[%s162_s29 + $0x28] sm:$0xff] (%p30_p4) }
  0x14   : > { %178 = vst [vmem:[%s159_s30 + $0x8] sm:$0xff] %v177_v1 }
  0x15   : > { %180 = vst [vmem:[%s159_s30 + $0x10] sm:$0xff] %v179_v2 }
  0x16   : > { %182 = vst [vmem:[%s159_s30 + $0x18] sm:$0xff] %v181_v3 }
  0x17 PF: > { %p735_p7 = scmp.ge.s32.totalorder %s800_s17, 1  ;;  %p187_p8 = scmp.lt.s32.totalorder %s800_s17, 3 }
  0x19   : > { %p188_p9 = pnand %p735_p7, %p187_p8 }
  0x1a   : > { %s194_s9 = sand.u32 (!%p188_p9), 1, %s792_s15  }
  0x1b   : > { %191 = sbr.rel (%p188_p9) target bundleno = 353 (0x161), region = 55  ;;  %s877_s10 = sshll.u32 (!%p188_p9), %s194_s9, 5 }
  0x1c   : > { %s196_s11 = scalar_lea.vmem (!%p188_p9), [#allocation3], %s877_s10  ;;  %s217_s8 = scalar_lea.vmem (!%p188_p9), [#allocation4], %s877_s10 }
  0x20   : > { %v224_v4 = vld [vmem:[%s1039_s1] sm:$0xff]  ;;  %v802_v5 = vmov 0   ;;  %v225_v6 = vld [vmem:[%s1039_s1 + $0x8] sm:$0xff]  ;;  %v222_v12 = vld [vmem:[%s196_s11 + $0x10] sm:$0xff]  ;;  %vm490_vm0 = vcmask 130048   ;;  %s748_s9 = sshll.u32 (%p858_p5), %s728_s18, 4 }
  0x21   : > { %776 = vset.pattern.permute.xlu0 %v802_v5  ;;  %777 = vset.pattern.permute.xlu1 %v802_v5  ;;  %v220_v8 = vld [vmem:[%s196_s11] sm:$0xff]  ;;  %v221_v9 = vld [vmem:[%s196_s11 + $0x8] sm:$0xff]  ;;  %v223_v13 = vld [vmem:[%s196_s11 + $0x18] sm:$0xff]  ;;  %s648_s12 = scalar_lea.vmem (%p858_p5), %s1042_s4, %s748_s9 }
  0x22   : > { %228 = vperm.xlu0 %776, %v224_v4  }
  0x2a   : > { %233 = vperm.xlu0 %776, %v225_v6  }
  0x94   : > { %v229_v7 = vpop.permute.xlu0 %228 }
  0x95   : > { %v880_v10 = vsub.f32 %v220_v8, %v229_v7  ;;  %v882_v11 = vsub.f32 %v221_v9, %v229_v7 }
  0x97   : > { %v304_v17 = vperm.slane %v880_v10, 6  ;;  %v305_v18 = vperm.slane %v882_v11, 6  ;;  %v294_v23 = vperm.slane %v880_v10, 5  ;;  %v295_v29 = vperm.slane %v882_v11, 5 }
  0x98   : > { %v284_v37 = vperm.slane %v880_v10, 4  ;;  %v285_v41 = vperm.slane %v882_v11, 4  ;;  %v274_v49 = vperm.slane %v880_v10, 3  ;;  %v275_v53 = vperm.slane %v882_v11, 3 }
  0x99   : > { %v306_v24 = vmul.f32 %v304_v17, %v880_v10  ;;  %v307_v28 = vmul.f32 %v305_v18, %v882_v11  ;;  %v296_v36 = vmul.f32 %v294_v23, %v880_v10  ;;  %v297_v40 = vmul.f32 %v295_v29, %v882_v11 }
  0x9a   : > { %v286_v48 = vmul.f32 %v284_v37, %v880_v10  ;;  %v287_v52 = vmul.f32 %v285_v41, %v882_v11  ;;  %v276_v60 = vmul.f32 %v274_v49, %v880_v10  ;;  %v264_v61 = vperm.slane %v880_v10, 2 }
  0x9b   : > { %v277_v0 = vmul.f32 %v275_v53, %v882_v11  ;;  %v265_v1 = vperm.slane %v882_v11, 2  ;;  %v254_v9 = vperm.slane %v880_v10, 1 }
  0x9c   : > { %v234_v14 = vpop.permute.xlu0 %233  ;;  %v266_v8 = vmul.f32 %v264_v61, %v880_v10 }
  0x9d   : > { %v884_v15 = vsub.f32 %v222_v12, %v234_v14  ;;  %v886_v16 = vsub.f32 %v223_v13, %v234_v14  ;;  %v267_v14 = vmul.f32 %v265_v1, %v882_v11 }
  0x9f   : > { %v308_v19 = vmul.f32 %v304_v17, %v884_v15  ;;  %v309_v20 = vmul.f32 %v305_v18, %v886_v16  ;;  %v384_v21 = vperm.slane %v884_v15, 6  ;;  %v394_v22 = vperm.slane %v884_v15, 7 }
  0xa0   : > { %v385_v27 = vperm.slane %v886_v16, 6  ;;  %v374_v30 = vperm.slane %v884_v15, 5  ;;  %v298_v31 = vmul.f32 %v294_v23, %v884_v15  ;;  %v299_v34 = vmul.f32 %v295_v29, %v886_v16 }
  0xa1   : > { %497 = vmatpush.msra.mxu0 %v308_v19  ;;  %566 = vmatpush.msra.mxu3 %v309_v20  ;;  %v388_v25 = vmul.f32 %v384_v21, %v884_v15  ;;  %v398_v26 = vmul.f32 %v394_v22, %v884_v15  ;;  %v386_v32 = vmul.f32 %v384_v21, %v880_v10  ;;  %v375_v38 = vperm.slane %v886_v16, 5  ;;  %v954_v20 = vld [vmem:[%s1040_s2 + $0x10] sm:$0xff] }
  0xa2   : > { %v396_v33 = vmul.f32 %v394_v22, %v880_v10  ;;  %v389_v35 = vmul.f32 %v385_v27, %v886_v16  ;;  %v378_v39 = vmul.f32 %v374_v30, %v884_v15  ;;  %v364_v42 = vperm.slane %v884_v15, 4 }
  0xa3   : > { %498 = vmatpush.msra.mxu0 %v306_v24  ;;  %520 = vmatpush.msra.mxu1 %v388_v25  ;;  %v387_v43 = vmul.f32 %v385_v27, %v882_v11  ;;  %v288_v44 = vmul.f32 %v284_v37, %v884_v15  ;;  %v376_v45 = vmul.f32 %v374_v30, %v880_v10  ;;  %v365_v50 = vperm.slane %v886_v16, 4 }
  0xa4   : > { %557 = vmatpush.msra.mxu2 %v398_v26  ;;  %567 = vmatpush.msra.mxu3 %v307_v28  ;;  %v289_v46 = vmul.f32 %v285_v41, %v886_v16  ;;  %v379_v47 = vmul.f32 %v375_v38, %v886_v16  ;;  %v368_v51 = vmul.f32 %v364_v42, %v884_v15  ;;  %v354_v54 = vperm.slane %v884_v15, 3 }
  0xa5   : > { %499 = vmatpush.msra.mxu0 %v298_v31  ;;  %521 = vmatpush.msra.mxu1 %v386_v32  ;;  %v377_v55 = vmul.f32 %v375_v38, %v882_v11  ;;  %v278_v56 = vmul.f32 %v274_v49, %v884_v15  ;;  %v366_v57 = vmul.f32 %v364_v42, %v880_v10  ;;  %v355_v62 = vperm.slane %v886_v16, 3 }
  0xa6   : > { %558 = vmatpush.msra.mxu2 %v396_v33  ;;  %568 = vmatpush.msra.mxu3 %v299_v34  ;;  %v279_v58 = vmul.f32 %v275_v53, %v886_v16  ;;  %v369_v59 = vmul.f32 %v365_v50, %v886_v16  ;;  %v358_v63 = vmul.f32 %v354_v54, %v884_v15  ;;  %v344_v2 = vperm.slane %v884_v15, 2  ;;  %v405_v53 = vld [vmem:[%s1040_s2 + $0x8] sm:$0xff] }
  0xa7   : > { %500 = vmatpush.msra.mxu0 %v296_v36  ;;  %522 = vmatpush.msra.mxu1 %v378_v39  ;;  %v367_v3 = vmul.f32 %v365_v50, %v882_v11  ;;  %v268_v4 = vmul.f32 %v264_v61, %v884_v15  ;;  %v356_v5 = vmul.f32 %v354_v54, %v880_v10  ;;  %v345_v12 = vperm.slane %v886_v16, 2 }
  0xa8   : > { %589 = vmatpush.msrb.mxu2 %v389_v35  ;;  %569 = vmatpush.msra.mxu3 %v297_v40  ;;  %v269_v6 = vmul.f32 %v265_v1, %v886_v16  ;;  %v359_v7 = vmul.f32 %v355_v62, %v886_v16  ;;  %v348_v13 = vmul.f32 %v344_v2, %v884_v15  ;;  %v334_v17 = vperm.slane %v884_v15, 1 }
  0xa9   : > { %501 = vmatpush.msra.mxu0 %v288_v44  ;;  %523 = vmatpush.msra.mxu1 %v376_v45  ;;  %v357_v18 = vmul.f32 %v355_v62, %v882_v11  ;;  %v258_v19 = vmul.f32 %v254_v9, %v884_v15  ;;  %v255_v21 = vperm.slane %v882_v11, 1  ;;  %v346_v22 = vmul.f32 %v344_v2, %v880_v10 }
  0xaa   : > { %590 = vmatpush.msrb.mxu2 %v387_v43  ;;  %570 = vmatpush.msra.mxu3 %v289_v46  ;;  %v349_v24 = vmul.f32 %v345_v12, %v886_v16  ;;  %v335_v25 = vperm.slane %v886_v16, 1  ;;  %v256_v26 = vmul.f32 %v254_v9, %v880_v10  ;;  %v338_v27 = vmul.f32 %v334_v17, %v884_v15  ;;  %v409_v43 = vld [vmem:[%s1040_s2 + $0x28] sm:$0xff] }
  0xab   : > { %502 = vmatpush.msra.mxu0 %v286_v48  ;;  %524 = vmatpush.msra.mxu1 %v368_v51  ;;  %v259_v23 = vmul.f32 %v255_v21, %v886_v16  ;;  %v244_v28 = vperm.slane %v880_v10, 0  ;;  %v324_v29 = vperm.slane %v884_v15, 0  ;;  %v257_v30 = vmul.f32 %v255_v21, %v882_v11  ;;  %v404_v48 = vld [vmem:[%s1040_s2] sm:$0xff] }
  0xac   : > { %591 = vmatpush.msrb.mxu2 %v379_v47  ;;  %571 = vmatpush.msra.mxu3 %v287_v52  ;;  %v347_v31 = vmul.f32 %v345_v12, %v882_v11  ;;  %v245_v32 = vperm.slane %v882_v11, 0  ;;  %v336_v34 = vmul.f32 %v334_v17, %v880_v10  ;;  %v339_v36 = vmul.f32 %v335_v25, %v886_v16 }
  0xad   : > { %503 = vmatpush.msra.mxu0 %v278_v56  ;;  %525 = vmatpush.msra.mxu1 %v366_v57  ;;  %v248_v33 = vmul.f32 %v244_v28, %v884_v15  ;;  %v246_v37 = vmul.f32 %v244_v28, %v880_v10  ;;  %v328_v38 = vmul.f32 %v324_v29, %v884_v15  ;;  %v325_v39 = vperm.slane %v886_v16, 0  ;;  %v408_v57 = vld [vmem:[%s1040_s2 + $0x20] sm:$0xff] }
  0xae   : > { %592 = vmatpush.msrb.mxu2 %v377_v55  ;;  %572 = vmatpush.msra.mxu3 %v279_v58  ;;  %v249_v35 = vmul.f32 %v245_v32, %v886_v16  ;;  %v247_v40 = vmul.f32 %v245_v32, %v882_v11  ;;  %v337_v41 = vmul.f32 %v335_v25, %v882_v11  ;;  %v314_v44 = vperm.slane %v880_v10, 7 }
  0xaf   : > { %504 = vmatpush.msra.mxu0 %v276_v60  ;;  %526 = vmatpush.msra.mxu1 %v358_v63  ;;  %v326_v42 = vmul.f32 %v324_v29, %v880_v10  ;;  %v395_v45 = vperm.slane %v886_v16, 7  ;;  %v329_v46 = vmul.f32 %v325_v39, %v886_v16  ;;  %v327_v49 = vmul.f32 %v325_v39, %v882_v11 }
  0xb0   : > { %593 = vmatpush.msrb.mxu2 %v369_v59  ;;  %573 = vmatpush.msra.mxu3 %v277_v0  ;;  %v318_v47 = vmul.f32 %v314_v44, %v884_v15  ;;  %v315_v51 = vperm.slane %v882_v11, 7  ;;  %v316_v52 = vmul.f32 %v314_v44, %v880_v10 }
  0xb1   : > { %505 = vmatpush.msra.mxu0 %v268_v4  ;;  %527 = vmatpush.msra.mxu1 %v356_v5  ;;  %v399_v50 = vmul.f32 %v395_v45, %v886_v16  ;;  %v397_v55 = vmul.f32 %v395_v45, %v882_v11 }
  0xb2   : > { %594 = vmatpush.msrb.mxu2 %v367_v3  ;;  %574 = vmatpush.msra.mxu3 %v269_v6  ;;  %v319_v54 = vmul.f32 %v315_v51, %v886_v16  ;;  %v317_v56 = vmul.f32 %v315_v51, %v882_v11 }
  0xb3   : > { %506 = vmatpush.msra.mxu0 %v266_v8  ;;  %528 = vmatpush.msra.mxu1 %v348_v13 }
  0xb4   : > { %595 = vmatpush.msrb.mxu2 %v359_v7  ;;  %575 = vmatpush.msra.mxu3 %v267_v14 }
  0xb5   : > { %507 = vmatpush.msra.mxu0 %v258_v19  ;;  %529 = vmatpush.msra.mxu1 %v346_v22 }
  0xb6   : > { %596 = vmatpush.msrb.mxu2 %v357_v18  ;;  %576 = vmatpush.msra.mxu3 %v259_v23 }
  0xb7   : > { %738 = vmatmul.msk.f32.vlgmr.msra.gmra.mxu2 %vm490_vm0, %v954_v20  ;;  %508 = vmatpush.msra.mxu0 %v256_v26 }
  0xb8   : > { %597 = vmatpush.msrb.mxu2 %v349_v24  ;;  %530 = vmatpush.msra.mxu1 %v338_v27 }
  0xb9   : > { %577 = vmatpush.msra.mxu3 %v257_v30  ;;  %509 = vmatpush.msra.mxu0 %v248_v33 }
  0xba   : > { %598 = vmatpush.msrb.mxu2 %v347_v31  ;;  %531 = vmatpush.msra.mxu1 %v336_v34 }
  0xbb   : > { %578 = vmatpush.msra.mxu3 %v249_v35  ;;  %510 = vmatpush.msra.mxu0 %v246_v37 }
  0xbc   : > { %599 = vmatpush.msrb.mxu2 %v339_v36  ;;  %532 = vmatpush.msra.mxu1 %v328_v38 }
  0xbd   : > { %579 = vmatpush.msra.mxu3 %v247_v40  ;;  %511 = vmatpush.msra.mxu0 %v884_v15  ;;  %v478_v15 = vld [vmem:[%s1041_s3] sm:$0xff] }
  0xbe   : > { %600 = vmatpush.msrb.mxu2 %v337_v41  ;;  %533 = vmatpush.msra.mxu1 %v326_v42 }
  0xbf   : > { %739 = vmatmul.msk.f32.gmra.mxu2 %vm490_vm0, %v409_v43  ;;  %580 = vmatpush.msra.mxu3 %v886_v16  ;;  %v479_v16 = vld [vmem:[%s1041_s3 + $0x8] sm:$0xff] }
  0xc0   : > { %601 = vmatpush.msrb.mxu2 %v329_v46  ;;  %512 = vmatpush.msra.mxu0 %v880_v10  ;;  %v407_v10 = vld [vmem:[%s1040_s2 + $0x18] sm:$0xff] }
  0xc1   : > { %534 = vmatpush.msra.mxu1 %v318_v47  ;;  %581 = vmatpush.msra.mxu3 %v882_v11 }
  0xc2   : > { %513 = vmatmul.f32.vlgmr.msra.gmra.mxu0 %v404_v48  ;;  %582 = vmatmul.f32.vlgmr.msra.gmra.mxu3 %v404_v48 }
  0xc3   : > { %602 = vmatpush.msrb.mxu2 %v327_v49  ;;  %626 = vmatpush.msrb.mxu0 %v399_v50 }
  0xc4   : > { %535 = vmatpush.msra.mxu1 %v316_v52  ;;  %482 = vperm.xlu1 %777, %v478_v15  }
  0xc5   : > { %536 = vmatmul.f32.vlgmr.msra.gmra.mxu1 %v405_v53  ;;  %603 = vmatpush.msrb.mxu2 %v319_v54 }
  0xc6   : > { %749 = vmatpush.msrb.mxu1 %v399_v50  ;;  %627 = vmatpush.msrb.mxu0 %v397_v55 }
  0xc7   : > { %604 = vmatpush.msrb.mxu2 %v317_v56 }
  0xc8   : > { %750 = vmatpush.msrb.mxu1 %v397_v55  ;;  %605 = vmatmul.f32.vlgmr.msrb.gmra.mxu2 %v405_v53 }
  0xca   : > { %516 = vmatmul.f32.gmra.mxu0 %v407_v10  ;;  %585 = vmatmul.f32.gmra.mxu3 %v407_v10 }
  0xcc   : > { %487 = vperm.xlu1 %777, %v479_v16  }
  0xcd   : > { %539 = vmatmul.f32.gmra.mxu1 %v408_v57 }
  0xd0   : > { %608 = vmatmul.f32.gmra.mxu2 %v408_v57 }
  0xd2   : > { %740 = vmatmul.msk.f32.vlgmr.msrb.gmra.mxu0 %vm490_vm0, %v954_v20 }
  0xd5   : > { %741 = vmatmul.msk.f32.vlgmr.msrb.gmra.mxu1 %vm490_vm0, %v409_v43 }
 0x136   : > { %v483_v58 = vpop.permute.xlu1 %482 }
 0x13a   : > { %v560_v11 = vpop.f32.mrf.mxu2 }
 0x13e   : > { %v488_v2 = vpop.permute.xlu1 %487 }
 0x13f   : > { %v514_v59 = vpop.f32.mrf.mxu0 }
 0x140   : > { %v515_v60 = vadd.f32 %v514_v59, %v483_v58 }
 0x142   : > { %v537_v61 = vpop.f32.mrf.mxu1  ;;  %v563_v62 = vpop.f32.mrf.mxu2 }
 0x143   : > { %v538_v63 = vadd.f32 %v537_v61, %v515_v60 }
 0x145   : > { %v561_v0 = vadd.f32 %v560_v11, %v538_v63  ;;  %v583_v1 = vpop.f32.mrf.mxu3 }
 0x146   : > { %v584_v5 = vadd.f32 %v583_v1, %v483_v58 }
 0x147   : > { %635 = vst [vmem:[%s217_s8] sm:$0xff] %v561_v0  ;;  %v517_v3 = vpop.f32.mrf.mxu0 }
 0x148   : > { %v518_v4 = vadd.f32 %v517_v3, %v488_v2 }
 0x14a   : > { %v540_v6 = vpop.f32.mrf.mxu1 }
 0x14b   : > { %v541_v7 = vadd.f32 %v540_v6, %v518_v4  ;;  %v606_v8 = vpop.f32.mrf.mxu2 }
 0x14c   : > { %v607_v12 = vadd.f32 %v606_v8, %v584_v5 }
 0x14d   : > { %v564_v9 = vadd.f32 %v563_v62, %v541_v7  ;;  %v586_v13 = vpop.f32.mrf.mxu3 }
 0x14e   : > { %v587_v18 = vadd.f32 %v586_v13, %v488_v2  ;;  %v661_v23 = vld [vmem:[%s217_s8] sm:$0xff] (%p858_p5) }
 0x14f   : > { %637 = vst [vmem:[%s217_s8 + $0x10] sm:$0xff] %v564_v9  ;;  %v629_v14 = vpop.f32.mrf.mxu0 }
 0x150   : > { %v630_v17 = vadd.f32 %v629_v14, %v607_v12  ;;  %662 = vst [vmem:[%s648_s12] sm:$0xff] (%p858_p5), %v661_v23 }
 0x152   : > { %636 = vst [vmem:[%s217_s8 + $0x8] sm:$0xff] %v630_v17  ;;  %v632_v20 = vpop.f32.mrf.mxu1 }
 0x153   : > { %v609_v19 = vpop.f32.mrf.mxu2 }
 0x154   : > { %v610_v21 = vadd.f32 %v609_v19, %v587_v18  ;;  %645 = sbr.rel (!%p858_p5) target bundleno = 353 (0x161), region = 63 }
 0x156   : > { %v633_v22 = vadd.f32 %v632_v20, %v610_v21  ;;  %v665_v25 = vld [vmem:[%s217_s8 + $0x10] sm:$0xff] (%p858_p5) }
 0x157   : > { %666 = vst [vmem:[%s648_s12 + $0x20] sm:$0xff] (%p858_p5), %v665_v25 }
 0x158   : > { %638 = vst [vmem:[%s217_s8 + $0x18] sm:$0xff] %v633_v22 }
 0x159   : > { %v663_v24 = vld [vmem:[%s217_s8 + $0x8] sm:$0xff] }
 0x15a   : > { %664 = vst [vmem:[%s648_s12 + $0x8] sm:$0xff] %v663_v24 }
 0x15f   : > { %v667_v26 = vld [vmem:[%s217_s8 + $0x18] sm:$0xff] }
 0x160   : > { %668 = vst [vmem:[%s648_s12 + $0x28] sm:$0xff] %v667_v26 }
 0x161 PF: > { %p11_p10 = scmp.ge.s32.totalorder %s845_s19, 4   ;;  %s1044_s15 = smov %s796_s16 }
 0x162   : > { %s1045_s16 = smov %s856_s22  ;;  %s1046_s17 = smov %s845_s19 }
 0x163   :  { %13 = sbr.rel (!%p11_p10) target bundleno = 2 (0x2), region = 117 }

</bundles_post_ra>
